<compile_context>
chip_gen: v7x
topology: tpu7x:2x2x1
jax: 0.10.0
libtpu: 0.0.40
codegen_flags: <defaults>
</compile_context>

<pallas_src>
import functools
import math

import jax
import jax.numpy as jnp
from jax.experimental import pallas as pl
from jax.experimental.pallas import tpu as pltpu


def _round_up(x, m):
    return ((x + m - 1) // m) * m


def _pad2(x, rows, cols):
    r, c = x.shape
    return jnp.pad(x, ((0, rows - r), (0, cols - c)))


def _fused_net_kernel(x_ref, w1t_ref, b1_ref, w2t_ref, b2_ref, out_ref, val1_ref):
    # x_ref:    (TB, Fp)  bf16   scattered-dense inputs (batch tile)
    # w1t_ref:  (Fp, Hp)  bf16   W1^T  (same block for every grid step -> DMA'd once)
    # b1_ref:   (1,  Hp)  f32
    # w2t_ref:  (Hp, TC)  bf16   W2^T  (class tile)
    # b2_ref:   (1,  TC)  f32
    # out_ref:  (TB, TC)  f32    dense logits tile
    # val1_ref: (TB, Hp)  f32    VMEM scratch: hidden activations for this batch tile

    # slide1: compute hidden activations once per batch tile (first class tile).
    @pl.when(pl.program_id(1) == 0)
    def _():
        h = jnp.dot(x_ref[...], w1t_ref[...], preferred_element_type=jnp.float32)
        val1_ref[...] = jnp.maximum(h + b1_ref[...], 0.0)

    # slide2: dense logits for this (batch tile, class tile).
    out = jnp.dot(val1_ref[...].astype(jnp.bfloat16), w2t_ref[...],
                  preferred_element_type=jnp.float32)
    out_ref[...] = out + b2_ref[...]


def fused_net_pallas(x_dense, w1t, b1, w2t, b2, *, tb, tc):
    Bp, Fp = x_dense.shape
    Hp = w1t.shape[1]
    Cp = w2t.shape[1]
    nb, nc = Bp // tb, Cp // tc
    return pl.pallas_call(
        _fused_net_kernel,
        out_shape=jax.ShapeDtypeStruct((Bp, Cp), jnp.float32),
        grid_spec=pltpu.PrefetchScalarGridSpec(
            num_scalar_prefetch=0,
            grid=(nb, nc),
            in_specs=[
                pl.BlockSpec((tb, Fp), lambda b, c: (b, 0)),
                pl.BlockSpec((Fp, Hp), lambda b, c: (0, 0)),
                pl.BlockSpec((1, Hp), lambda b, c: (0, 0)),
                pl.BlockSpec((Hp, tc), lambda b, c: (0, c)),
                pl.BlockSpec((1, tc), lambda b, c: (0, c)),
            ],
            out_specs=pl.BlockSpec((tb, tc), lambda b, c: (b, c)),
            scratch_shapes=[pltpu.VMEM((tb, Hp), jnp.float32)],
        ),
        compiler_params=pltpu.CompilerParams(
            dimension_semantics=("parallel", "arbitrary"),
            vmem_limit_bytes=32 * 1024 * 1024,
        ),
    )(x_dense, w1t, b1, w2t, b2)


def truncated_normal_init(key, shape, std):
    # deterministic stand-in for truncated_normal_init_ (values in (-2, 2) * std)
    return jax.random.truncated_normal(key, -2.0, 2.0, shape, jnp.float32) * std


def init_net_params(key, feature_dim, hidden_dim, n_classes):
    k1, k2, k3, k4 = jax.random.split(key, 4)
    std1 = 2.0 / math.sqrt(feature_dim + hidden_dim)
    std2 = 2.0 / math.sqrt(hidden_dim + n_classes)
    return {
        "w1": truncated_normal_init(k1, (hidden_dim, feature_dim), std1),  # (out, in)
        "b1": truncated_normal_init(k2, (hidden_dim,), std1),
        "w2": truncated_normal_init(k3, (n_classes, hidden_dim), std2),
        "b2": truncated_normal_init(k4, (n_classes,), std2),
    }


@jax.jit
def net_forward(params, in_values, active_in_indices, active_label_indices):
    w1, b1 = params["w1"], params["b1"]  # (H, F), (H,)
    w2, b2 = params["w2"], params["b2"]  # (C, H), (C,)
    B, _ = in_values.shape
    H, F = w1.shape
    C = w2.shape[0]

    # ---- slide1 input: scatter sparse actives into a dense (B, F) slab ----
    # Duplicate active_in_indices sum, matching the gather-and-sum semantics of
    # the reference layer.
    x_dense = jnp.zeros((B, F), jnp.float32)
    x_dense = x_dense.at[jnp.arange(B)[:, None], active_in_indices].add(in_values)

    # ---- MXU/lane-friendly padded shapes & tiles (static at trace time) ----
    Bp = _round_up(B, 8)
    tb = min(Bp, 128)
    Bp = _round_up(Bp, tb)
    Fp = _round_up(F, 128)
    Hp = _round_up(H, 128)
    Cp = _round_up(C, 128)
    tc = 128
    for cand in (512, 256, 128):
        if Cp % cand == 0:
            tc = cand
            break
    tc = min(tc, Cp)

    # bf16 operands for the MXU; zero padding keeps results exact for the
    # un-padded region (padded hidden units have zero bias & zero W2^T rows).
    xb = _pad2(x_dense, Bp, Fp).astype(jnp.bfloat16)
    w1t = _pad2(jnp.transpose(w1, (1, 0)), Fp, Hp).astype(jnp.bfloat16)
    w2t = _pad2(jnp.transpose(w2, (1, 0)), Hp, Cp).astype(jnp.bfloat16)
    b1p = _pad2(b1[None, :], 1, Hp)
    b2p = _pad2(b2[None, :], 1, Cp)

    logits = fused_net_pallas(xb, w1t, b1p, w2t, b2p, tb=tb, tc=tc)
    logits = logits[:B, :C]

    # ---- slide2 active-output selection ----
    # TODO(synk): LSH hash-table sampling (K=9, L=50 buckets) of output neurons
    # is not reproducible without the slideLayer hash tables; active output
    # indices are supplied explicitly (the `active_label_indices` path).
    val2 = jnp.take_along_axis(logits, active_label_indices, axis=1)  # (B, n_labels)
    return val2, active_label_indices


if __name__ == "__main__":
    # small shapes consistent with the module
    feature_dim, hidden_dim, n_classes = 64, 32, 16
    batch, n_active_in, n_active_labels = 2, 8, 4

    key = jax.random.PRNGKey(0)
    kp, kv, ki, kl = jax.random.split(key, 4)

    params = init_net_params(kp, feature_dim, hidden_dim, n_classes)
    in_values = jax.random.normal(kv, (batch, n_active_in), jnp.float32)
    active_in_indices = jax.random.randint(ki, (batch, n_active_in), 0, feature_dim, jnp.int32)
    active_label_indices = jax.random.randint(kl, (batch, n_active_labels), 0, n_classes, jnp.int32)

    val2, ind2 = net_forward(params, in_values, active_in_indices, active_label_indices)
    jax.block_until_ready((val2, ind2))

    # pure-JAX f32 reference check (kernel uses bf16 MXU operands with f32
    # accumulation -> loosened tolerance, expected precision change).
    w1g = jnp.transpose(params["w1"], (1, 0))[active_in_indices]
    ref1 = jnp.maximum(jnp.einsum("bj,bjh->bh", in_values, w1g) + params["b1"][None, :], 0.0)
    ref2 = (
        jnp.einsum("bh,bch->bc", ref1, params["w2"][active_label_indices])
        + params["b2"][active_label_indices]
    )
    assert val2.shape == (batch, n_active_labels)
    assert jnp.allclose(val2, ref2, atol=5e-2, rtol=5e-2), (val2, ref2)
    assert jnp.array_equal(ind2, active_label_indices)

    print("KERNEL_OK")
</pallas_src>

<mosaic_0001>
module attributes {stable_mosaic.version = 11 : i64} {
  func.func private @main(%arg0: i32) attributes {dimension_semantics = [#tpu.dimension_semantics<core_parallel>], iteration_bounds = array<i64: 2>, tpu.core_type = #tpu.core_type<sc_scalar_subcore>, window_params = []} {
    return
  }
}

module attributes {stable_mosaic.version = 11 : i64} {
  func.func private @main(%arg0: i32) attributes {dimension_semantics = [#tpu.dimension_semantics<core_parallel>], iteration_bounds = array<i64: 2>, tpu.core_type = #tpu.core_type<sc_scalar_subcore>, window_params = []} {
    return
  }
}

module attributes {stable_mosaic.version = 11 : i64} {
  func.func @_fused_net_kernel(%arg0: i32, %arg1: i32, %arg2: memref<8x128xbf16, #tpu.memory_space<vmem>>, %arg3: memref<128x128xbf16, #tpu.memory_space<vmem>>, %arg4: memref<1x128xf32, #tpu.memory_space<vmem>>, %arg5: memref<128x128xbf16, #tpu.memory_space<vmem>>, %arg6: memref<1x128xf32, #tpu.memory_space<vmem>>, %arg7: memref<8x128xf32, #tpu.memory_space<vmem>>, %arg8: memref<8x128xf32, #tpu.memory_space<vmem>>) attributes {dimension_semantics = [#tpu.dimension_semantics<parallel>, #tpu.dimension_semantics<arbitrary>], iteration_bounds = array<i64: 1, 1>, scalar_prefetch = 0 : i64, scratch_operands = 1 : i64, tpu.core_type = #tpu.core_type<tc>, window_params = [{transform_indices = @transform_0, window_bounds = array<i64: 8, 128>}, {pipeline_mode = #tpu.pipeline_mode<synchronous>, transform_indices = @transform_1, window_bounds = array<i64: 128, 128>}, {pipeline_mode = #tpu.pipeline_mode<synchronous>, transform_indices = @transform_2, window_bounds = array<i64: 1, 128>}, {transform_indices = @transform_3, window_bounds = array<i64: 128, 128>}, {transform_indices = @transform_4, window_bounds = array<i64: 1, 128>}, {transform_indices = @transform_5, window_bounds = array<i64: 8, 128>}]} {
    %c0_i32 = arith.constant 0 : i32
    %0 = arith.cmpi eq, %arg1, %c0_i32 : i32
    %1 = arith.extui %0 : i1 to i32
    %c0_i32_0 = arith.constant 0 : i32
    %2 = arith.cmpi ne, %1, %c0_i32_0 : i32
    scf.if %2 {
      %c0_8 = arith.constant 0 : index
      %c0_9 = arith.constant 0 : index
      %11 = vector.load %arg2[%c0_8, %c0_9] : memref<8x128xbf16, #tpu.memory_space<vmem>>, vector<8x128xbf16>
      %c0_10 = arith.constant 0 : index
      %c0_11 = arith.constant 0 : index
      %12 = vector.load %arg3[%c0_10, %c0_11] : memref<128x128xbf16, #tpu.memory_space<vmem>>, vector<128x128xbf16>
      %cst_12 = arith.constant dense<0.000000e+00> : vector<8x128xf32>
      %13 = tpu.matmul %11, %12, %cst_12 {dimension_numbers = #tpu.dot_dimension_numbers<[1], [0], [0], [1], [0, 0, 1, 1], [], []>} : vector<8x128xbf16>, vector<128x128xbf16>, vector<8x128xf32> -> vector<8x128xf32>
      %c0_13 = arith.constant 0 : index
      %c0_14 = arith.constant 0 : index
      %14 = vector.load %arg4[%c0_13, %c0_14] : memref<1x128xf32, #tpu.memory_space<vmem>>, vector<1x128xf32>
      %15 = vector.broadcast %14 : vector<1x128xf32> to vector<8x128xf32>
      %16 = arith.addf %13, %15 : vector<8x128xf32>
      %cst_15 = arith.constant 0.000000e+00 : f32
      %17 = vector.broadcast %cst_15 : f32 to vector<8x128xf32>
      %18 = arith.maximumf %16, %17 : vector<8x128xf32>
      %c0_16 = arith.constant 0 : index
      %c0_17 = arith.constant 0 : index
      %19 = vector.load %arg8[%c0_16, %c0_17] : memref<8x128xf32, #tpu.memory_space<vmem>>, vector<8x128xf32>
      tpu.vector_store %arg8[%c0_16, %c0_17], %18 {strides = array<i32>} : memref<8x128xf32, #tpu.memory_space<vmem>>, vector<8x128xf32>,
    } else {
    }
    %c0 = arith.constant 0 : index
    %c0_1 = arith.constant 0 : index
    %3 = vector.load %arg8[%c0, %c0_1] : memref<8x128xf32, #tpu.memory_space<vmem>>, vector<8x128xf32>
    %4 = arith.truncf %3 : vector<8x128xf32> to vector<8x128xbf16>
    %c0_2 = arith.constant 0 : index
    %c0_3 = arith.constant 0 : index
    %5 = vector.load %arg5[%c0_2, %c0_3] : memref<128x128xbf16, #tpu.memory_space<vmem>>, vector<128x128xbf16>
    %cst = arith.constant dense<0.000000e+00> : vector<8x128xf32>
    %6 = tpu.matmul %4, %5, %cst {dimension_numbers = #tpu.dot_dimension_numbers<[1], [0], [0], [1], [0, 0, 1, 1], [], []>} : vector<8x128xbf16>, vector<128x128xbf16>, vector<8x128xf32> -> vector<8x128xf32>
    %c0_4 = arith.constant 0 : index
    %c0_5 = arith.constant 0 : index
    %7 = vector.load %arg6[%c0_4, %c0_5] : memref<1x128xf32, #tpu.memory_space<vmem>>, vector<1x128xf32>
    %8 = vector.broadcast %7 : vector<1x128xf32> to vector<8x128xf32>
    %9 = arith.addf %6, %8 : vector<8x128xf32>
    %c0_6 = arith.constant 0 : index
    %c0_7 = arith.constant 0 : index
    %10 = vector.load %arg7[%c0_6, %c0_7] : memref<8x128xf32, #tpu.memory_space<vmem>>, vector<8x128xf32>
    tpu.vector_store %arg7[%c0_6, %c0_7], %9 {strides = array<i32>} : memref<8x128xf32, #tpu.memory_space<vmem>>, vector<8x128xf32>,
    return
  }
  func.func @transform_0(%arg0: i32, %arg1: i32) -> (i32, i32) {
    %c0_i32 = arith.constant 0 : i32
    %c0_i32_0 = arith.constant 0 : i32
    return %arg0, %c0_i32 : i32, i32
  }
  func.func @transform_1(%arg0: i32, %arg1: i32) -> (i32, i32) {
    %c0_i32 = arith.constant 0 : i32
    %c0_i32_0 = arith.constant 0 : i32
    %c0_i32_1 = arith.constant 0 : i32
    return %c0_i32, %c0_i32_0 : i32, i32
  }
  func.func @transform_2(%arg0: i32, %arg1: i32) -> (i32, i32) {
    %c0_i32 = arith.constant 0 : i32
    %c0_i32_0 = arith.constant 0 : i32
    %c0_i32_1 = arith.constant 0 : i32
    return %c0_i32, %c0_i32_0 : i32, i32
  }
  func.func @transform_3(%arg0: i32, %arg1: i32) -> (i32, i32) {
    %c0_i32 = arith.constant 0 : i32
    %c0_i32_0 = arith.constant 0 : i32
    return %c0_i32, %arg1 : i32, i32
  }
  func.func @transform_4(%arg0: i32, %arg1: i32) -> (i32, i32) {
    %c0_i32 = arith.constant 0 : i32
    %c0_i32_0 = arith.constant 0 : i32
    return %c0_i32, %arg1 : i32, i32
  }
  func.func @transform_5(%arg0: i32, %arg1: i32) -> (i32, i32) {
    %c0_i32 = arith.constant 0 : i32
    return %arg0, %arg1 : i32, i32
  }
}

</mosaic_0001>

<bundles_post_ra>
// kernel: net_forward.1
= control target key start
LH: loop header
LB: loop body
LE: loop exit
PB: predicated region body
PF: predicated region fallthrough
CT: control target
= control target key end

     0   :  { %v351_v0 = vmov 0.0   ;;  %vm352_vm0 = vmmov 0   ;;  %s443_s1 = inlined_call_operand.vmem [shape: bf16[128,128], index: 1, kind: input, shape index: {}]   ;;  %s444_s3 = inlined_call_operand.vmem [shape: bf16[128,128], index: 3, kind: input, shape index: {}]   ;;  %s445_s0 = inlined_call_operand.vmem [shape: bf16[8,128], index: 0, kind: input, shape index: {}]   ;;  %s446_s2 = inlined_call_operand.vmem [shape: f32[1,128], index: 2, kind: input, shape index: {}]   ;;  %s447_s4 = inlined_call_operand.vmem [shape: f32[1,128], index: 4, kind: input, shape index: {}]   ;;  %s448_s5 = inlined_call_operand.vmem [shape: f32[8,128], index: 5, kind: output, shape index: {}]  }
   0x1   :  { %293 = vmatprep.subr.bf16.mxu0 %v351_v0  ;;  %v335_v1 = vld [vmem:[%s443_s1] sm:$0xff]   ;;  %309 = vmatprep.mubr.msk.bf16.mxu0 %vm352_vm0, %v351_v0  ;;  %v336_v2 = vld [vmem:[%s443_s1 + $0x8] sm:$0xff]   ;;  %v337_v3 = vld [vmem:[%s443_s1 + $0x10] sm:$0xff]  }
   0x2   :  { %313 = vmatprep.subr.bf16.mxu1 %v351_v0  ;;  %329 = vmatprep.mubr.msk.bf16.mxu1 %vm352_vm0, %v351_v0  ;;  %v343_v4 = vld [vmem:[%s444_s3] sm:$0xff]   ;;  %v338_v5 = vld [vmem:[%s443_s1 + $0x18] sm:$0xff]   ;;  %v344_v6 = vld [vmem:[%s444_s3 + $0x8] sm:$0xff]  }
   0x3   :  { %294 = vmatpush3.bf16.msra.mxu0 %v335_v1  ;;  %314 = vmatpush3.bf16.msra.mxu1 %v343_v4  ;;  %v339_v7 = vld [vmem:[%s443_s1 + $0x20] sm:$0xff]   ;;  %v345_v8 = vld [vmem:[%s444_s3 + $0x10] sm:$0xff]   ;;  %v340_v9 = vld [vmem:[%s443_s1 + $0x28] sm:$0xff]  }
   0x4   :  { %295 = vmatprep.subr.bf16.mxu0 %v351_v0  ;;  %315 = vmatprep.subr.bf16.mxu1 %v351_v0  ;;  %v346_v10 = vld [vmem:[%s444_s3 + $0x18] sm:$0xff]   ;;  %v341_v11 = vld [vmem:[%s443_s1 + $0x30] sm:$0xff]   ;;  %v347_v12 = vld [vmem:[%s444_s3 + $0x20] sm:$0xff]  }
   0x5   :  { %v342_v13 = vld [vmem:[%s443_s1 + $0x38] sm:$0xff]   ;;  %v348_v14 = vld [vmem:[%s444_s3 + $0x28] sm:$0xff]   ;;  %v25_v15 = vld [vmem:[%s445_s0] sm:$0xf] }
   0x6   :  { %v349_v16 = vld [vmem:[%s444_s3 + $0x30] sm:$0xff]   ;;  %v350_v17 = vld [vmem:[%s444_s3 + $0x38] sm:$0xff]   ;;  %v257_v18 = vld [vmem:[%s446_s2] ss:$0 sm:$0xff] }
   0x7   :  { %296 = vmatpush3.bf16.msra.mxu0 %v336_v2  ;;  %316 = vmatpush3.bf16.msra.mxu1 %v344_v6  ;;  %v266_v26 = vld [vmem:[%s447_s4] ss:$0 sm:$0xff] }
   0x8   :  { %297 = vmatprep.subr.bf16.mxu0 %v351_v0  ;;  %317 = vmatprep.subr.bf16.mxu1 %v351_v0 }
   0xb   :  { %298 = vmatpush3.bf16.msra.mxu0 %v337_v3  ;;  %318 = vmatpush3.bf16.msra.mxu1 %v345_v8 }
   0xc   :  { %299 = vmatprep.subr.bf16.mxu0 %v351_v0  ;;  %319 = vmatprep.subr.bf16.mxu1 %v351_v0 }
   0xf   :  { %300 = vmatpush3.bf16.msra.mxu0 %v338_v5  ;;  %320 = vmatpush3.bf16.msra.mxu1 %v346_v10 }
  0x10   :  { %301 = vmatprep.subr.bf16.mxu0 %v351_v0  ;;  %321 = vmatprep.subr.bf16.mxu1 %v351_v0 }
  0x13   :  { %302 = vmatpush3.bf16.msra.mxu0 %v339_v7  ;;  %322 = vmatpush3.bf16.msra.mxu1 %v347_v12 }
  0x14   :  { %303 = vmatprep.subr.bf16.mxu0 %v351_v0  ;;  %323 = vmatprep.subr.bf16.mxu1 %v351_v0 }
  0x17   :  { %304 = vmatpush3.bf16.msra.mxu0 %v340_v9  ;;  %324 = vmatpush3.bf16.msra.mxu1 %v348_v14 }
  0x18   :  { %305 = vmatprep.subr.bf16.mxu0 %v351_v0  ;;  %325 = vmatprep.subr.bf16.mxu1 %v351_v0 }
  0x1b   :  { %306 = vmatpush3.bf16.msra.mxu0 %v341_v11  ;;  %326 = vmatpush3.bf16.msra.mxu1 %v349_v16 }
  0x1c   :  { %307 = vmatprep.subr.bf16.mxu0 %v351_v0  ;;  %327 = vmatprep.subr.bf16.mxu1 %v351_v0 }
  0x1f   :  { %308 = vmatpush3.bf16.msra.mxu0 %v342_v13  ;;  %328 = vmatpush3.bf16.msra.mxu1 %v350_v17 }
  0x22   :  { %310 = vmatmul.mubr.bf16.vlgmr.msra.gmra.mrb[0].mxu0 %v25_v15 }
  0xf5   :  { %v131_v19 = vpop.f32.mrb[0].mxu0 }
  0xf6   :  { %v132_v20 = vadd.f32 %v257_v18, %v131_v19  ;;  %v311_v21 = vpop.f32.mrb[1].mxu0 }
  0xf7   :  { %v134_v22 = vpop.f32.mrb[2].mxu0 }
  0xf8   :  { %v137_v23 = vmax.f32 %v132_v20, 0.0  ;;  %v312_v24 = vpop.f32.mrb[3].mxu0 }
  0xfa   :  { %v140_v25 = vpack.c.bf16 %v137_v23, %v137_v23 }
  0xfc   :  { %330 = vmatmul.mubr.bf16.vlgmr.msra.gmra.mrb[0].mxu1 %v140_v25 }
 0x1cf   :  { %v246_v27 = vpop.f32.mrb[0].mxu1 }
 0x1d0   :  { %v247_v28 = vadd.f32 %v266_v26, %v246_v27  ;;  %v331_v29 = vpop.f32.mrb[1].mxu1 }
 0x1d1   :  { %v249_v30 = vpop.f32.mrb[2].mxu1 }
 0x1d2   :  { %252 = vst [vmem:[%s448_s5] sm:$0xff] %v247_v28  ;;  %v332_v31 = vpop.f32.mrb[3].mxu1 }

</bundles_post_ra>
